<compile_context>
chip_gen: v5e
topology: v5e:2x2
jax: 0.10.0
libtpu: 0.0.40
codegen_flags: <defaults>
</compile_context>

<pallas_src>
import functools

import jax
import jax.numpy as jnp
from jax.experimental import pallas as pl
from jax.experimental.pallas import tpu as pltpu


def _round_up(n, m):
    return ((n + m - 1) // m) * m


def mlp_kernel(x_ref, w1_ref, b1_ref, w2_ref, b2_ref, w3_ref, b3_ref, o_ref):
    # x arrives unpadded / uncast straight from HBM (f32, K = input_dim); the
    # bf16 downcast for the MXU happens here on the VMEM tile.
    x = x_ref[...].astype(jnp.bfloat16)
    # fc1 + ReLU  (bf16 MXU inputs, f32 accumulate, f32 bias/ReLU on the VPU).
    h1 = jnp.dot(x, w1_ref[...], preferred_element_type=jnp.float32)
    h1 = jnp.maximum(h1 + b1_ref[...], 0.0).astype(jnp.bfloat16)
    # fc2 + ReLU
    h2 = jnp.dot(h1, w2_ref[...], preferred_element_type=jnp.float32)
    h2 = jnp.maximum(h2 + b2_ref[...], 0.0).astype(jnp.bfloat16)
    # fc3: lane-dense 128-wide padded logits, no activation; bf16 store halves
    # the dominant HBM write stream.
    h3 = jnp.dot(h2, w3_ref[...], preferred_element_type=jnp.float32)
    o_ref[...] = (h3 + b3_ref[...]).astype(o_ref.dtype)


def prepare_kernel_params(params, input_dim, num_classes):
    """Pad hidden/class dims to 128-multiples; weights -> bf16, biases stay f32.

    fc1's input (K) dim stays unpadded: the kernel takes x at its native width.
    """
    hidden = params["w1"].shape[1]
    h_pad = _round_up(hidden, 128)        # 400 -> 512
    c_pad = _round_up(num_classes, 128)   # 2   -> 128

    def pad_w(w, rows, cols):
        return jnp.pad(
            w, ((0, rows - w.shape[0]), (0, cols - w.shape[1]))
        ).astype(jnp.bfloat16)

    def pad_b(b, cols):
        return jnp.pad(b, ((0, 0), (0, cols - b.shape[1])))  # keep f32

    return dict(
        w1=pad_w(params["w1"], input_dim, h_pad), b1=pad_b(params["b1"], h_pad),
        w2=pad_w(params["w2"], h_pad, h_pad), b2=pad_b(params["b2"], h_pad),
        w3=pad_w(params["w3"], h_pad, c_pad), b3=pad_b(params["b3"], c_pad),
    )


def _pick_b_tile(B):
    """Weight-stationary batch tile.

    * B < 128: one tile, rounded to 16 (bf16 sublane-packing minimum).
    * B >= 128: fat tiles amortize the ~0.35us per-grid-step overhead; prefer
      256-multiples (full MXU rows on v6e/v7x; 128 already native on v5e),
      capped at 512 (VMEM headroom) and at <= B/2 so the "parallel" batch grid
      has >= 2 steps to shard across v7x's two TensorCores.
    """
    if B < 128:
        return _round_up(B, 16)
    for cand in (512, 256, 128):
        if B >= 2 * cand:
            return cand
    return 128


@functools.partial(jax.jit, static_argnames=("num_classes",))
def dense_model_forward(x, kparams, *, num_classes):
    """x: [B, input_dim] f32. kparams: padded bf16/f32 params from prepare_kernel_params."""
    B, D = x.shape
    c_pad = kparams["w3"].shape[1]

    b_tile = _pick_b_tile(B)
    b_pad = _round_up(B, b_tile)
    # Only pad batch rows when B is not a tile multiple (no pad op otherwise).
    x_p = x if b_pad == B else jnp.pad(x, ((0, b_pad - B), (0, 0)))

    def stationary(shape):
        return pl.BlockSpec(shape, lambda i: (0, 0))

    out = pl.pallas_call(
        mlp_kernel,
        out_shape=jax.ShapeDtypeStruct((b_pad, c_pad), jnp.bfloat16),
        grid=(b_pad // b_tile,),
        in_specs=[
            # Last block dim == full array dim, so the unpadded D is legal.
            pl.BlockSpec((b_tile, D), lambda i: (i, 0)),
            stationary(kparams["w1"].shape), stationary(kparams["b1"].shape),
            stationary(kparams["w2"].shape), stationary(kparams["b2"].shape),
            stationary(kparams["w3"].shape), stationary(kparams["b3"].shape),
        ],
        out_specs=pl.BlockSpec((b_tile, c_pad), lambda i: (i, 0)),
        compiler_params=pltpu.CompilerParams(dimension_semantics=("parallel",)),
    )(
        x_p,
        kparams["w1"], kparams["b1"],
        kparams["w2"], kparams["b2"],
        kparams["w3"], kparams["b3"],
    )
    # Tiny [B, num_classes] slice of the lane-dense bf16 logits; cast back to
    # f32 so the public API matches the PyTorch module's output dtype.
    return out[:B, :num_classes].astype(jnp.float32)


def init_params(key, input_dim, num_classes=2, hidden=400):
    """Deterministic init mimicking nn.Linear's uniform(-1/sqrt(fan_in), 1/sqrt(fan_in)).

    Stored unpadded, f32, (in, out) layout; kernel params come from
    prepare_kernel_params."""
    ks = jax.random.split(key, 6)

    def linear(kw, kb, fan_in, fan_out):
        bound = 1.0 / jnp.sqrt(fan_in)
        w = jax.random.uniform(kw, (fan_in, fan_out), jnp.float32, -bound, bound)
        b = jax.random.uniform(kb, (1, fan_out), jnp.float32, -bound, bound)
        return w, b

    w1, b1 = linear(ks[0], ks[1], input_dim, hidden)
    w2, b2 = linear(ks[2], ks[3], hidden, hidden)
    w3, b3 = linear(ks[4], ks[5], hidden, num_classes)
    return dict(w1=w1, b1=b1, w2=w2, b2=b2, w3=w3, b3=b3)


def reference_forward_f32(x, p):
    h1 = jnp.maximum(x @ p["w1"] + p["b1"], 0.0)
    h2 = jnp.maximum(h1 @ p["w2"] + p["b2"], 0.0)
    return h2 @ p["w3"] + p["b3"]


def reference_forward_bf16(x, kp, num_classes):
    """Pure-JAX mirror of the exact kernel math
    (bf16 MXU inputs, f32 accumulation, f32 epilogue, bf16 logit store)."""
    x_b = x.astype(jnp.bfloat16)
    h1 = jnp.dot(x_b, kp["w1"], preferred_element_type=jnp.float32) + kp["b1"]
    h1 = jnp.maximum(h1, 0.0).astype(jnp.bfloat16)
    h2 = jnp.dot(h1, kp["w2"], preferred_element_type=jnp.float32) + kp["b2"]
    h2 = jnp.maximum(h2, 0.0).astype(jnp.bfloat16)
    h3 = jnp.dot(h2, kp["w3"], preferred_element_type=jnp.float32) + kp["b3"]
    return h3.astype(jnp.bfloat16)[:, :num_classes].astype(jnp.float32)


if __name__ == "__main__":
    key = jax.random.PRNGKey(0)
    k_params, k_x = jax.random.split(key)

    batch = 8
    input_dim = 32
    num_classes = 2

    params = init_params(k_params, input_dim, num_classes)
    kparams = prepare_kernel_params(params, input_dim, num_classes)
    x = jax.random.normal(k_x, (batch, input_dim), jnp.float32)

    out = dense_model_forward(x, kparams, num_classes=num_classes)
    out = jax.block_until_ready(out)
    assert out.shape == (batch, num_classes)
    assert out.dtype == jnp.float32

    # Tight check against a pure-JAX version of the exact same bf16 math.
    ref_bf16 = reference_forward_bf16(x, kparams, num_classes)
    assert jnp.allclose(out, ref_bf16, atol=2e-3, rtol=2e-3)

    # Loose sanity check against the full-f32 unpadded reference
    # (bf16 MXU inputs / bf16 logit store introduce ~1e-3-level error).
    ref_f32 = reference_forward_f32(x, params)
    assert jnp.allclose(out, ref_f32, atol=5e-2)

    print("KERNEL_OK")
</pallas_src>

<mosaic_0001>
module attributes {stable_mosaic.version = 11 : i64} {
  func.func @mlp_kernel(%arg0: i32, %arg1: memref<16x32xf32, #tpu.memory_space<vmem>>, %arg2: memref<32x512xbf16, #tpu.memory_space<vmem>>, %arg3: memref<1x512xf32, #tpu.memory_space<vmem>>, %arg4: memref<512x512xbf16, #tpu.memory_space<vmem>>, %arg5: memref<1x512xf32, #tpu.memory_space<vmem>>, %arg6: memref<512x128xbf16, #tpu.memory_space<vmem>>, %arg7: memref<1x128xf32, #tpu.memory_space<vmem>>, %arg8: memref<16x128xbf16, #tpu.memory_space<vmem>>) attributes {dimension_semantics = [#tpu.dimension_semantics<parallel>], iteration_bounds = array<i64: 1>, scalar_prefetch = 0 : i64, scratch_operands = 0 : i64, tpu.core_type = #tpu.core_type<tc>, window_params = [{transform_indices = @transform_0, window_bounds = array<i64: 16, 32>}, {pipeline_mode = #tpu.pipeline_mode<synchronous>, transform_indices = @transform_1, window_bounds = array<i64: 32, 512>}, {pipeline_mode = #tpu.pipeline_mode<synchronous>, transform_indices = @transform_2, window_bounds = array<i64: 1, 512>}, {pipeline_mode = #tpu.pipeline_mode<synchronous>, transform_indices = @transform_3, window_bounds = array<i64: 512, 512>}, {pipeline_mode = #tpu.pipeline_mode<synchronous>, transform_indices = @transform_4, window_bounds = array<i64: 1, 512>}, {pipeline_mode = #tpu.pipeline_mode<synchronous>, transform_indices = @transform_5, window_bounds = array<i64: 512, 128>}, {pipeline_mode = #tpu.pipeline_mode<synchronous>, transform_indices = @transform_6, window_bounds = array<i64: 1, 128>}, {transform_indices = @transform_7, window_bounds = array<i64: 16, 128>}]} {
    %c0 = arith.constant 0 : index
    %c0_0 = arith.constant 0 : index
    %0 = vector.load %arg1[%c0, %c0_0] : memref<16x32xf32, #tpu.memory_space<vmem>>, vector<16x32xf32>
    %1 = arith.truncf %0 : vector<16x32xf32> to vector<16x32xbf16>
    %c0_1 = arith.constant 0 : index
    %c0_2 = arith.constant 0 : index
    %2 = vector.load %arg2[%c0_1, %c0_2] : memref<32x512xbf16, #tpu.memory_space<vmem>>, vector<32x512xbf16>
    %cst = arith.constant dense<0.000000e+00> : vector<16x512xf32>
    %3 = tpu.matmul %1, %2, %cst {dimension_numbers = #tpu.dot_dimension_numbers<[1], [0], [0], [1], [0, 0, 1, 1], [], []>} : vector<16x32xbf16>, vector<32x512xbf16>, vector<16x512xf32> -> vector<16x512xf32>
    %c0_3 = arith.constant 0 : index
    %c0_4 = arith.constant 0 : index
    %4 = vector.load %arg3[%c0_3, %c0_4] : memref<1x512xf32, #tpu.memory_space<vmem>>, vector<1x512xf32>
    %5 = vector.broadcast %4 : vector<1x512xf32> to vector<16x512xf32>
    %6 = arith.addf %3, %5 : vector<16x512xf32>
    %cst_5 = arith.constant 0.000000e+00 : f32
    %7 = vector.broadcast %cst_5 : f32 to vector<16x512xf32>
    %8 = arith.maximumf %6, %7 : vector<16x512xf32>
    %9 = arith.truncf %8 : vector<16x512xf32> to vector<16x512xbf16>
    %c0_6 = arith.constant 0 : index
    %c0_7 = arith.constant 0 : index
    %10 = vector.load %arg4[%c0_6, %c0_7] : memref<512x512xbf16, #tpu.memory_space<vmem>>, vector<512x512xbf16>
    %cst_8 = arith.constant dense<0.000000e+00> : vector<16x512xf32>
    %11 = tpu.matmul %9, %10, %cst_8 {dimension_numbers = #tpu.dot_dimension_numbers<[1], [0], [0], [1], [0, 0, 1, 1], [], []>} : vector<16x512xbf16>, vector<512x512xbf16>, vector<16x512xf32> -> vector<16x512xf32>
    %c0_9 = arith.constant 0 : index
    %c0_10 = arith.constant 0 : index
    %12 = vector.load %arg5[%c0_9, %c0_10] : memref<1x512xf32, #tpu.memory_space<vmem>>, vector<1x512xf32>
    %13 = vector.broadcast %12 : vector<1x512xf32> to vector<16x512xf32>
    %14 = arith.addf %11, %13 : vector<16x512xf32>
    %cst_11 = arith.constant 0.000000e+00 : f32
    %15 = vector.broadcast %cst_11 : f32 to vector<16x512xf32>
    %16 = arith.maximumf %14, %15 : vector<16x512xf32>
    %17 = arith.truncf %16 : vector<16x512xf32> to vector<16x512xbf16>
    %c0_12 = arith.constant 0 : index
    %c0_13 = arith.constant 0 : index
    %18 = vector.load %arg6[%c0_12, %c0_13] : memref<512x128xbf16, #tpu.memory_space<vmem>>, vector<512x128xbf16>
    %cst_14 = arith.constant dense<0.000000e+00> : vector<16x128xf32>
    %19 = tpu.matmul %17, %18, %cst_14 {dimension_numbers = #tpu.dot_dimension_numbers<[1], [0], [0], [1], [0, 0, 1, 1], [], []>} : vector<16x512xbf16>, vector<512x128xbf16>, vector<16x128xf32> -> vector<16x128xf32>
    %c0_15 = arith.constant 0 : index
    %c0_16 = arith.constant 0 : index
    %20 = vector.load %arg7[%c0_15, %c0_16] : memref<1x128xf32, #tpu.memory_space<vmem>>, vector<1x128xf32>
    %21 = vector.broadcast %20 : vector<1x128xf32> to vector<16x128xf32>
    %22 = arith.addf %19, %21 : vector<16x128xf32>
    %23 = arith.truncf %22 : vector<16x128xf32> to vector<16x128xbf16>
    %c0_17 = arith.constant 0 : index
    %c0_18 = arith.constant 0 : index
    %24 = vector.load %arg8[%c0_17, %c0_18] : memref<16x128xbf16, #tpu.memory_space<vmem>>, vector<16x128xbf16>
    tpu.vector_store %arg8[%c0_17, %c0_18], %23 {strides = array<i32>} : memref<16x128xbf16, #tpu.memory_space<vmem>>, vector<16x128xbf16>,
    return
  }
  func.func @transform_0(%arg0: i32) -> (i32, i32) {
    %c0_i32 = arith.constant 0 : i32
    %c0_i32_0 = arith.constant 0 : i32
    return %arg0, %c0_i32 : i32, i32
  }
  func.func @transform_1(%arg0: i32) -> (i32, i32) {
    %c0_i32 = arith.constant 0 : i32
    %c0_i32_0 = arith.constant 0 : i32
    %c0_i32_1 = arith.constant 0 : i32
    return %c0_i32, %c0_i32_0 : i32, i32
  }
  func.func @transform_2(%arg0: i32) -> (i32, i32) {
    %c0_i32 = arith.constant 0 : i32
    %c0_i32_0 = arith.constant 0 : i32
    %c0_i32_1 = arith.constant 0 : i32
    return %c0_i32, %c0_i32_0 : i32, i32
  }
  func.func @transform_3(%arg0: i32) -> (i32, i32) {
    %c0_i32 = arith.constant 0 : i32
    %c0_i32_0 = arith.constant 0 : i32
    %c0_i32_1 = arith.constant 0 : i32
    return %c0_i32, %c0_i32_0 : i32, i32
  }
  func.func @transform_4(%arg0: i32) -> (i32, i32) {
    %c0_i32 = arith.constant 0 : i32
    %c0_i32_0 = arith.constant 0 : i32
    %c0_i32_1 = arith.constant 0 : i32
    return %c0_i32, %c0_i32_0 : i32, i32
  }
  func.func @transform_5(%arg0: i32) -> (i32, i32) {
    %c0_i32 = arith.constant 0 : i32
    %c0_i32_0 = arith.constant 0 : i32
    %c0_i32_1 = arith.constant 0 : i32
    return %c0_i32, %c0_i32_0 : i32, i32
  }
  func.func @transform_6(%arg0: i32) -> (i32, i32) {
    %c0_i32 = arith.constant 0 : i32
    %c0_i32_0 = arith.constant 0 : i32
    %c0_i32_1 = arith.constant 0 : i32
    return %c0_i32, %c0_i32_0 : i32, i32
  }
  func.func @transform_7(%arg0: i32) -> (i32, i32) {
    %c0_i32 = arith.constant 0 : i32
    %c0_i32_0 = arith.constant 0 : i32
    return %arg0, %c0_i32 : i32, i32
  }
}

</mosaic_0001>

<bundles_post_ra>
// kernel: dense_model_forward.1
= control target key start
LH: loop header
LB: loop body
LE: loop exit
PB: predicated region body
PF: predicated region fallthrough
CT: control target
= control target key end

     0   :  { %12 = vsyncpa [#allocation3], 0  ;;  %s2588_s0 = inlined_call_operand.vmem [shape: f32[16,32], index: 0, kind: input, shape index: {}]   ;;  %s2589_s1 = inlined_call_operand.hbm [shape: bf16[32,512], index: 1, kind: input, shape index: {}]   ;;  %s2590_s2 = inlined_call_operand.vmem [shape: f32[1,512], index: 2, kind: input, shape index: {}]   ;;  %s2591_s3 = inlined_call_operand.hbm [shape: bf16[512,512], index: 3, kind: input, shape index: {}]   ;;  %s2592_s4 = inlined_call_operand.vmem [shape: f32[1,512], index: 4, kind: input, shape index: {}]   ;;  %s2593_s5 = inlined_call_operand.hbm [shape: bf16[512,128], index: 5, kind: input, shape index: {}]   ;;  %s2594_s6 = inlined_call_operand.vmem [shape: f32[1,128], index: 6, kind: input, shape index: {}]   ;;  %s2595_s7 = inlined_call_operand.vmem [shape: bf16[16,128], index: 7, kind: output, shape index: {}]  }
   0x1   :  { %13 = vsyncpa [#allocation5], 0  ;;  %s35_s26 = sshll.u32 %s2591_s3, 4  ;;  %s2480_s27 = smov [#allocation4]   ;;  %s36_s26 = int_to_ptr.hbm [resolvable:$true] %s35_s26 }
   0x2   :  { %s37_s28 = sshll.u32 %s2480_s27, 4  ;;  %s20_s8 = sshll.u32 %s2589_s1, 4  ;;  %s38_s28 = int_to_ptr.vmem [resolvable:$true] %s37_s28  ;;  %s21_s8 = int_to_ptr.hbm [resolvable:$true] %s20_s8 }
   0x3   :  { %s2481_s9 = smov 256   ;;  %s2482_s10 = smov 16  }
   0x4   :  { %43 = dma.hbm_to_vmem [thread:$0]  %s36_s26, 16384, %s38_s28, [#allocation5], %s2481_s9, %s2481_s9, %s2482_s10  }
   0x5   :  { %s2483_s11 = smov [#allocation2]   ;;  %s50_s15 = sshll.u32 %s2593_s5, 4  ;;  %s51_s15 = int_to_ptr.hbm [resolvable:$true] %s50_s15 }
   0x6   :  { %s22_s12 = sshll.u32 %s2483_s11, 4  ;;  %s2484_s3 = smov [#allocation6]   ;;  %s23_s12 = int_to_ptr.vmem [resolvable:$true] %s22_s12 }
   0x7   :  { %28 = dma.hbm_to_vmem [thread:$0]  %s21_s8, 1024, %s23_s12, [#allocation3], %s2481_s9, %s2481_s9, %s2482_s10  }
   0x8   :  { %s52_s16 = sshll.u32 %s2484_s3, 4  ;;  %s2485_s17 = smov 64   ;;  %s53_s16 = int_to_ptr.vmem [resolvable:$true] %s52_s16 }
   0x9   :  { %s2486_s18 = smov 4  }
   0xa   :  { %58 = dma.hbm_to_vmem [thread:$0]  %s51_s15, 4096, %s53_s16, [#allocation5], %s2485_s17, %s2485_s17, %s2486_s18  }
   0xb   :  { %2476 = dma.done.wait [#allocation3], 1024  }
   0xc   :  { %2477 = vsyncadd [#allocation3], 4294966272 }
   0xd   :  { %2478 = dma.done.wait [#allocation5], 20480  }
   0xe   :  { %2479 = vsyncadd [#allocation5], 4294946816  ;;  %v1565_v0 = vld [vmem:[#allocation2 + $0x20] sm:$0xf]  ;;  %v2229_v1 = vld [vmem:[#allocation2 + $0x2c] sm:$0xf0] }
   0xf   :  { %v2227_v2 = vld [vmem:[#allocation2 + $0x24] sm:$0xf]  ;;  %v1566_v3 = vor.u32 %v2229_v1, %v1565_v0  ;;  %v1567_v4 = vld [vmem:[#allocation2 + $0x30] sm:$0xf0]  ;;  %v1573_v5 = vld [vmem:[#allocation2 + $0x28] sm:$0xf] }
  0x10   :  { %v2230_v6 = vld [vmem:[#allocation2 + $0x34] sm:$0xf0]  ;;  %v1570_v7 = vor.u32 %v2227_v2, %v1567_v4  ;;  %v2228_v9 = vld [vmem:[#allocation2 + $0x2c] sm:$0xf]  ;;  %v1575_v10 = vld [vmem:[#allocation2 + $0x38] sm:$0xf0] }
  0x11   :  { %v1574_v8 = vor.u32 %v2230_v6, %v1573_v5  ;;  %v1549_v11 = vld [vmem:[#allocation2] sm:$0xf]  ;;  %145 = vmatpush.bf16.msra.mxu0 %v1566_v3  ;;  %v1578_v12 = vor.u32 %v2228_v9, %v1575_v10  ;;  %v2225_v13 = vld [vmem:[#allocation2 + $0xc] sm:$0xf0]  ;;  %v2223_v14 = vld [vmem:[#allocation2 + $0x4] sm:$0xf] }
  0x12   :  { %v1551_v15 = vld [vmem:[#allocation2 + $0x10] sm:$0xf0]  ;;  %159 = vmatpush.bf16.msra.mxu1 %v1570_v7  ;;  %v1550_v16 = vor.u32 %v2225_v13, %v1549_v11  ;;  %v1557_v18 = vld [vmem:[#allocation2 + $0x8] sm:$0xf]  ;;  %v2226_v19 = vld [vmem:[#allocation2 + $0x14] sm:$0xf0] }
  0x13   :  { %173 = vmatpush.bf16.msra.mxu2 %v1574_v8  ;;  %v1554_v17 = vor.u32 %v2223_v14, %v1551_v15  ;;  %v2224_v20 = vld [vmem:[#allocation2 + $0xc] sm:$0xf]  ;;  %187 = vmatpush.bf16.msra.mxu3 %v1578_v12  ;;  %v1558_v21 = vor.u32 %v2226_v19, %v1557_v18  ;;  %v1559_v22 = vld [vmem:[#allocation2 + $0x18] sm:$0xf0]  ;;  %v74_v23 = vld [vmem:[%s2588_s0] sm:$0xff]  ;;  %vm135_vm0 = vcmask 261120  }
  0x14   :  { %v75_v24 = vld [vmem:[%s2588_s0 + $0x8] sm:$0xff]  ;;  %v1562_v25 = vor.u32 %v2224_v20, %v1559_v22  ;;  %v1697_v27 = vld [vmem:[#allocation4 + $0xe0] sm:$0xf]  ;;  %v2261_v28 = vld [vmem:[#allocation4 + $0xec] sm:$0xf0] }
  0x15   :  { %v76_v26 = vpack.c.bf16 %v75_v24, %v74_v23  ;;  %v1825_v29 = vld [vmem:[#allocation4 + $0x1e0] sm:$0xf]  ;;  %146 = vmatpush.bf16.msra.mxu0 %v1550_v16  ;;  %v1698_v30 = vor.u32 %v2261_v28, %v1697_v27  ;;  %v2293_v31 = vld [vmem:[#allocation4 + $0x1ec] sm:$0xf0] }
  0x16   :  { %v1681_v32 = vld [vmem:[#allocation4 + $0xc0] sm:$0xf]  ;;  %v2257_v33 = vld [vmem:[#allocation4 + $0xcc] sm:$0xf0]  ;;  %160 = vmatpush.bf16.msra.mxu1 %v1554_v17  ;;  %v1826_v34 = vor.u32 %v2293_v31, %v1825_v29 }
  0x17   :  { %174 = vmatpush.bf16.msra.mxu2 %v1558_v21  ;;  %v1809_v35 = vld [vmem:[#allocation4 + $0x1c0] sm:$0xf]  ;;  %v2289_v36 = vld [vmem:[#allocation4 + $0x1cc] sm:$0xf0]  ;;  %188 = vmatpush.bf16.msra.mxu3 %v1562_v25  ;;  %v1682_v38 = vor.u32 %v2257_v33, %v1681_v32 }
  0x18   :  { %v1953_v37 = vld [vmem:[#allocation4 + $0x2e0] sm:$0xf]  ;;  %v2325_v39 = vld [vmem:[#allocation4 + $0x2ec] sm:$0xf0]  ;;  %1579 = vmatmul.msk.bf16.vlgmr.msra.gmra.mxu0 %vm135_vm0, %v76_v26  ;;  %v1810_v42 = vor.u32 %v2289_v36, %v1809_v35 }
  0x19   :  { %985 = vmatpush.bf16.msrb.mxu0 %v1698_v30  ;;  %v2081_v40 = vld [vmem:[#allocation4 + $0x3e0] sm:$0xf]  ;;  %v2357_v41 = vld [vmem:[#allocation4 + $0x3ec] sm:$0xf0]  ;;  %v1954_v43 = vor.u32 %v2325_v39, %v1953_v37  ;;  %1580 = vmatmul.msk.bf16.vlgmr.msra.gmra.mxu1 %vm135_vm0, %v76_v26 }
  0x1a   :  { %999 = vmatpush.bf16.msrb.mxu1 %v1826_v34  ;;  %v2082_v44 = vor.u32 %v2357_v41, %v2081_v40  ;;  %v1665_v45 = vld [vmem:[#allocation4 + $0xa0] sm:$0xf]  ;;  %v2253_v46 = vld [vmem:[#allocation4 + $0xac] sm:$0xf0]  ;;  %1581 = vmatmul.msk.bf16.vlgmr.msra.gmra.mxu2 %vm135_vm0, %v76_v26 }
  0x1b   :  { %v1793_v47 = vld [vmem:[#allocation4 + $0x1a0] sm:$0xf]  ;;  %v2285_v48 = vld [vmem:[#allocation4 + $0x1ac] sm:$0xf0]  ;;  %1582 = vmatmul.msk.bf16.vlgmr.msra.gmra.mxu3 %vm135_vm0, %v76_v26  ;;  %1013 = vmatpush.bf16.msrb.mxu2 %v1954_v43  ;;  %v1666_v54 = vor.u32 %v2253_v46, %v1665_v45 }
  0x1c   :  { %v1937_v49 = vld [vmem:[#allocation4 + $0x2c0] sm:$0xf]  ;;  %v2321_v50 = vld [vmem:[#allocation4 + $0x2cc] sm:$0xf0]  ;;  %1027 = vmatpush.bf16.msrb.mxu3 %v2082_v44  ;;  %v1794_v58 = vor.u32 %v2285_v48, %v1793_v47 }
  0x1d   :  { %v1938_v51 = vor.u32 %v2321_v50, %v1937_v49  ;;  %v2065_v52 = vld [vmem:[#allocation4 + $0x3c0] sm:$0xf]  ;;  %v2353_v53 = vld [vmem:[#allocation4 + $0x3cc] sm:$0xf0]  ;;  %986 = vmatpush.bf16.msrb.mxu0 %v1682_v38  ;;  %v2259_v49 = vld [vmem:[#allocation4 + $0xe4] sm:$0xf] }
  0x1e   :  { %v2066_v55 = vor.u32 %v2353_v53, %v2065_v52  ;;  %v1649_v56 = vld [vmem:[#allocation4 + $0x80] sm:$0xf]  ;;  %v2249_v57 = vld [vmem:[#allocation4 + $0x8c] sm:$0xf0]  ;;  %1000 = vmatpush.bf16.msrb.mxu1 %v1810_v42  ;;  %v1699_v50 = vld [vmem:[#allocation4 + $0xf0] sm:$0xf0] }
  0x1f   :  { %v1921_v59 = vld [vmem:[#allocation4 + $0x2a0] sm:$0xf]  ;;  %v2317_v60 = vld [vmem:[#allocation4 + $0x2ac] sm:$0xf0]  ;;  %1014 = vmatpush.bf16.msrb.mxu2 %v1938_v51  ;;  %v1650_v2 = vor.u32 %v2249_v57, %v1649_v56  ;;  %v2291_v51 = vld [vmem:[#allocation4 + $0x1e4] sm:$0xf] }
  0x20   :  { %v2049_v61 = vld [vmem:[#allocation4 + $0x3a0] sm:$0xf]  ;;  %v2281_v63 = vld [vmem:[#allocation4 + $0x18c] sm:$0xf0]  ;;  %v1922_v1 = vor.u32 %v2317_v60, %v1921_v59  ;;  %1028 = vmatpush.bf16.msrb.mxu3 %v2066_v55  ;;  %v1827_v52 = vld [vmem:[#allocation4 + $0x1f0] sm:$0xf0] }
  0x21   :  { %v1777_v62 = vld [vmem:[#allocation4 + $0x180] sm:$0xf]  ;;  %v2349_v0 = vld [vmem:[#allocation4 + $0x3ac] sm:$0xf0]  ;;  %987 = vmatpush.bf16.msrb.mxu0 %v1666_v54  ;;  %v2255_v56 = vld [vmem:[#allocation4 + $0xc4] sm:$0xf] }
  0x22   :  { %v2050_v3 = vor.u32 %v2349_v0, %v2049_v61  ;;  %v1633_v4 = vld [vmem:[#allocation4 + $0x60] sm:$0xf]  ;;  %v2313_v6 = vld [vmem:[#allocation4 + $0x28c] sm:$0xf0]  ;;  %1001 = vmatpush.bf16.msrb.mxu1 %v1794_v58  ;;  %v1778_v7 = vor.u32 %v2281_v63, %v1777_v62  ;;  %v1683_v57 = vld [vmem:[#allocation4 + $0xd0] sm:$0xf0]  ;;  %v1702_v62 = vor.u32 %v2259_v49, %v1699_v50 }
  0x23   :  { %v1905_v5 = vld [vmem:[#allocation4 + $0x280] sm:$0xf]  ;;  %v2245_v8 = vld [vmem:[#allocation4 + $0x6c] sm:$0xf0]  ;;  %1015 = vmatpush.bf16.msrb.mxu2 %v1922_v1  ;;  %v2323_v0 = vld [vmem:[#allocation4 + $0x2e4] sm:$0xf] }
  0x24   :  { %v2033_v9 = vld [vmem:[#allocation4 + $0x380] sm:$0xf]  ;;  %v2345_v10 = vld [vmem:[#allocation4 + $0x38c] sm:$0xf0]  ;;  %v1906_v13 = vor.u32 %v2313_v6, %v1905_v5  ;;  %1029 = vmatpush.bf16.msrb.mxu3 %v2050_v3  ;;  %v1634_v14 = vor.u32 %v2245_v8, %v1633_v4  ;;  %v1955_v1 = vld [vmem:[#allocation4 + $0x2f0] sm:$0xf0] }
  0x25   :  { %v1761_v11 = vld [vmem:[#allocation4 + $0x160] sm:$0xf]  ;;  %v2277_v12 = vld [vmem:[#allocation4 + $0x16c] sm:$0xf0]  ;;  %988 = vmatpush.bf16.msrb.mxu0 %v1650_v2  ;;  %v2034_v15 = vor.u32 %v2345_v10, %v2033_v9  ;;  %v1830_v2 = vor.u32 %v2291_v51, %v1827_v52  ;;  %v2355_v3 = vld [vmem:[#allocation4 + $0x3e4] sm:$0xf]  ;;  %v1958_v9 = vor.u32 %v2323_v0, %v1955_v1  ;;  %v1686_v10 = vor.u32 %v2255_v56, %v1683_v57 }
  0x26   :  { %v1617_v16 = vld [vmem:[#allocation4 + $0x40] sm:$0xf]  ;;  %v2309_v18 = vld [vmem:[#allocation4 + $0x26c] sm:$0xf0]  ;;  %1002 = vmatpush.bf16.msrb.mxu1 %v1778_v7  ;;  %v1762_v19 = vor.u32 %v2277_v12, %v1761_v11  ;;  %v2083_v4 = vld [vmem:[#allocation4 + $0x3f0] sm:$0xf0] }
  0x27   :  { %v1889_v17 = vld [vmem:[#allocation4 + $0x260] sm:$0xf]  ;;  %v2241_v20 = vld [vmem:[#allocation4 + $0x4c] sm:$0xf0]  ;;  %1016 = vmatpush.bf16.msrb.mxu2 %v1906_v13  ;;  %v2287_v5 = vld [vmem:[#allocation4 + $0x1c4] sm:$0xf]  ;;  %v2086_v11 = vor.u32 %v2355_v3, %v2083_v4 }
  0x28   :  { %v2017_v21 = vld [vmem:[#allocation4 + $0x360] sm:$0xf]  ;;  %v2341_v22 = vld [vmem:[#allocation4 + $0x36c] sm:$0xf0]  ;;  %v1890_v25 = vor.u32 %v2309_v18, %v1889_v17  ;;  %1030 = vmatpush.bf16.msrb.mxu3 %v2034_v15  ;;  %v1618_v26 = vor.u32 %v2241_v20, %v1617_v16  ;;  %v1811_v6 = vld [vmem:[#allocation4 + $0x1d0] sm:$0xf0] }
  0x29   :  { %v1745_v23 = vld [vmem:[#allocation4 + $0x140] sm:$0xf]  ;;  %v2273_v24 = vld [vmem:[#allocation4 + $0x14c] sm:$0xf0]  ;;  %989 = vmatpush.bf16.msrb.mxu0 %v1634_v14  ;;  %v2018_v27 = vor.u32 %v2341_v22, %v2017_v21  ;;  %v2251_v12 = vld [vmem:[#allocation4 + $0xa4] sm:$0xf]  ;;  %v1814_v15 = vor.u32 %v2287_v5, %v1811_v6 }
  0x2a   :  { %v1601_v28 = vld [vmem:[#allocation4 + $0x20] sm:$0xf]  ;;  %v2305_v30 = vld [vmem:[#allocation4 + $0x24c] sm:$0xf0]  ;;  %1003 = vmatpush.bf16.msrb.mxu1 %v1762_v19  ;;  %v1746_v31 = vor.u32 %v2273_v24, %v1745_v23  ;;  %v2319_v13 = vld [vmem:[#allocation4 + $0x2c4] sm:$0xf] }
  0x2b   :  { %v1873_v29 = vld [vmem:[#allocation4 + $0x240] sm:$0xf]  ;;  %v2237_v32 = vld [vmem:[#allocation4 + $0x2c] sm:$0xf0]  ;;  %1017 = vmatpush.bf16.msrb.mxu2 %v1890_v25  ;;  %v1939_v14 = vld [vmem:[#allocation4 + $0x2d0] sm:$0xf0] }
  0x2c   :  { %v2001_v33 = vld [vmem:[#allocation4 + $0x340] sm:$0xf]  ;;  %v2337_v34 = vld [vmem:[#allocation4 + $0x34c] sm:$0xf0]  ;;  %v1874_v37 = vor.u32 %v2305_v30, %v1873_v29  ;;  %1031 = vmatpush.bf16.msrb.mxu3 %v2018_v27  ;;  %v1602_v39 = vor.u32 %v2237_v32, %v1601_v28  ;;  %v1667_v16 = vld [vmem:[#allocation4 + $0xb0] sm:$0xf0]  ;;  %v1942_v21 = vor.u32 %v2319_v13, %v1939_v14 }
  0x2d   :  { %v1729_v35 = vld [vmem:[#allocation4 + $0x120] sm:$0xf]  ;;  %v2269_v36 = vld [vmem:[#allocation4 + $0x12c] sm:$0xf0]  ;;  %990 = vmatpush.bf16.msrb.mxu0 %v1618_v26  ;;  %v2002_v40 = vor.u32 %v2337_v34, %v2001_v33  ;;  %v2351_v17 = vld [vmem:[#allocation4 + $0x3c4] sm:$0xf]  ;;  %v1670_v22 = vor.u32 %v2251_v12, %v1667_v16 }
  0x2e   :  { %v1585_v38 = vld [vmem:[#allocation4] sm:$0xf]  ;;  %v2233_v41 = vld [vmem:[#allocation4 + $0xc] sm:$0xf0]  ;;  %1004 = vmatpush.bf16.msrb.mxu1 %v1746_v31  ;;  %v1730_v44 = vor.u32 %v2269_v36, %v1729_v35  ;;  %v2067_v18 = vld [vmem:[#allocation4 + $0x3d0] sm:$0xf0] }
  0x2f   :  { %v1857_v42 = vld [vmem:[#allocation4 + $0x220] sm:$0xf]  ;;  %v2301_v43 = vld [vmem:[#allocation4 + $0x22c] sm:$0xf0]  ;;  %1018 = vmatpush.bf16.msrb.mxu2 %v1874_v37  ;;  %v1586_v54 = vor.u32 %v2233_v41, %v1585_v38  ;;  %v2283_v19 = vld [vmem:[#allocation4 + $0x1a4] sm:$0xf]  ;;  %v2070_v23 = vor.u32 %v2351_v17, %v2067_v18 }
  0x30   :  { %v1713_v45 = vld [vmem:[#allocation4 + $0x100] sm:$0xf]  ;;  %v2333_v47 = vld [vmem:[#allocation4 + $0x32c] sm:$0xf0]  ;;  %v1858_v53 = vor.u32 %v2301_v43, %v1857_v42  ;;  %1032 = vmatpush.bf16.msrb.mxu3 %v2002_v40  ;;  %v1795_v20 = vld [vmem:[#allocation4 + $0x1b0] sm:$0xf0] }
  0x31   :  { %v1985_v46 = vld [vmem:[#allocation4 + $0x320] sm:$0xf]  ;;  %v2265_v48 = vld [vmem:[#allocation4 + $0x10c] sm:$0xf0]  ;;  %991 = vmatpush.bf16.msrb.mxu0 %v1602_v39  ;;  %v1798_v24 = vor.u32 %v2283_v19, %v1795_v20  ;;  %v2247_v25 = vld [vmem:[#allocation4 + $0x84] sm:$0xf] }
  0x32   :  { %v1986_v55 = vor.u32 %v2333_v47, %v1985_v46  ;;  %v1841_v58 = vld [vmem:[#allocation4 + $0x200] sm:$0xf]  ;;  %v2297_v59 = vld [vmem:[#allocation4 + $0x20c] sm:$0xf0]  ;;  %1005 = vmatpush.bf16.msrb.mxu1 %v1730_v44  ;;  %v1714_v61 = vor.u32 %v2265_v48, %v1713_v45  ;;  %v1651_v26 = vld [vmem:[#allocation4 + $0x90] sm:$0xf0] }
  0x33   :  { %v1969_v60 = vld [vmem:[#allocation4 + $0x300] sm:$0xf]  ;;  %v2329_v63 = vld [vmem:[#allocation4 + $0x30c] sm:$0xf0]  ;;  %1019 = vmatpush.bf16.msrb.mxu2 %v1858_v53  ;;  %v1842_v7 = vor.u32 %v2297_v59, %v1841_v58  ;;  %v2279_v27 = vld [vmem:[#allocation4 + $0x184] sm:$0xf]  ;;  %v1654_v29 = vor.u32 %v2247_v25, %v1651_v26 }
  0x34   :  { %1033 = vmatpush.bf16.msrb.mxu3 %v1986_v55  ;;  %v1970_v8 = vor.u32 %v2329_v63, %v1969_v60  ;;  %v1779_v28 = vld [vmem:[#allocation4 + $0x190] sm:$0xf0]  ;;  %v2315_v31 = vld [vmem:[#allocation4 + $0x2a4] sm:$0xf] }
  0x35   :  { %992 = vmatpush.bf16.msrb.mxu0 %v1586_v54  ;;  %v1782_v30 = vor.u32 %v2279_v27, %v1779_v28  ;;  %v1923_v32 = vld [vmem:[#allocation4 + $0x2b0] sm:$0xf0]  ;;  %v2347_v33 = vld [vmem:[#allocation4 + $0x3a4] sm:$0xf]  ;;  %v85_v27 = vld [vmem:[%s2590_s2] sm:$0xf] }
  0x36   :  { %1006 = vmatpush.bf16.msrb.mxu1 %v1714_v61  ;;  %v1926_v34 = vor.u32 %v2315_v31, %v1923_v32  ;;  %v2051_v35 = vld [vmem:[#allocation4 + $0x3b0] sm:$0xf0]  ;;  %v2243_v37 = vld [vmem:[#allocation4 + $0x64] sm:$0xf]  ;;  %v88_v31 = vperm.slane %v85_v27, 1 }
  0x37   :  { %1020 = vmatpush.bf16.msrb.mxu2 %v1842_v7  ;;  %v2054_v36 = vor.u32 %v2347_v33, %v2051_v35  ;;  %v1635_v38 = vld [vmem:[#allocation4 + $0x70] sm:$0xf0]  ;;  %v2275_v39 = vld [vmem:[#allocation4 + $0x164] sm:$0xf] }
  0x38   :  { %1034 = vmatpush.bf16.msrb.mxu3 %v1970_v8  ;;  %v1638_v40 = vor.u32 %v2243_v37, %v1635_v38  ;;  %v1763_v41 = vld [vmem:[#allocation4 + $0x170] sm:$0xf0]  ;;  %v2311_v43 = vld [vmem:[#allocation4 + $0x284] sm:$0xf] }
  0x39   :  { %1041 = vmatpush.bf16.msra.mxu0 %v1702_v62  ;;  %v1766_v42 = vor.u32 %v2275_v39, %v1763_v41  ;;  %v1907_v44 = vld [vmem:[#allocation4 + $0x290] sm:$0xf0]  ;;  %v2343_v46 = vld [vmem:[#allocation4 + $0x384] sm:$0xf]  ;;  %v2262_v41 = vld [vmem:[#allocation4 + $0xf4] sm:$0xf0] }
  0x3a   :  { %1055 = vmatpush.bf16.msra.mxu1 %v1830_v2  ;;  %v1910_v45 = vor.u32 %v2311_v43, %v1907_v44  ;;  %v2035_v47 = vld [vmem:[#allocation4 + $0x390] sm:$0xf0]  ;;  %v2239_v49 = vld [vmem:[#allocation4 + $0x44] sm:$0xf]  ;;  %v89_v43 = vperm.slane %v85_v27, 2 }
  0x3b   :  { %1069 = vmatpush.bf16.msra.mxu2 %v1958_v9  ;;  %v2038_v48 = vor.u32 %v2343_v46, %v2035_v47  ;;  %v1619_v50 = vld [vmem:[#allocation4 + $0x50] sm:$0xf0]  ;;  %v2271_v51 = vld [vmem:[#allocation4 + $0x144] sm:$0xf]  ;;  %v2294_v46 = vld [vmem:[#allocation4 + $0x1f4] sm:$0xf0] }
  0x3c   :  { %1083 = vmatpush.bf16.msra.mxu3 %v2086_v11  ;;  %v1622_v52 = vor.u32 %v2239_v49, %v1619_v50  ;;  %v1747_v53 = vld [vmem:[#allocation4 + $0x150] sm:$0xf0]  ;;  %v2307_v55 = vld [vmem:[#allocation4 + $0x264] sm:$0xf]  ;;  %v90_v47 = vperm.slane %v85_v27, 3 }
  0x3d   :  { %1042 = vmatpush.bf16.msra.mxu0 %v1686_v10  ;;  %v1750_v54 = vor.u32 %v2271_v51, %v1747_v53  ;;  %v1891_v56 = vld [vmem:[#allocation4 + $0x270] sm:$0xf0]  ;;  %v2339_v57 = vld [vmem:[#allocation4 + $0x364] sm:$0xf]  ;;  %v1689_v53 = vld [vmem:[#allocation4 + $0xc8] sm:$0xf] }
  0x3e   :  { %1056 = vmatpush.bf16.msra.mxu1 %v1814_v15  ;;  %v1894_v58 = vor.u32 %v2307_v55, %v1891_v56  ;;  %v2019_v59 = vld [vmem:[#allocation4 + $0x370] sm:$0xf0]  ;;  %v2235_v61 = vld [vmem:[#allocation4 + $0x24] sm:$0xf] }
  0x3f   :  { %1070 = vmatpush.bf16.msra.mxu2 %v1942_v21  ;;  %v2022_v60 = vor.u32 %v2339_v57, %v2019_v59  ;;  %v1603_v62 = vld [vmem:[#allocation4 + $0x30] sm:$0xf0]  ;;  %v2267_v0 = vld [vmem:[#allocation4 + $0x124] sm:$0xf]  ;;  %v1817_v57 = vld [vmem:[#allocation4 + $0x1c8] sm:$0xf] }
  0x40   :  { %1084 = vmatpush.bf16.msra.mxu3 %v2070_v23  ;;  %v1606_v63 = vor.u32 %v2235_v61, %v1603_v62  ;;  %v1731_v1 = vld [vmem:[#allocation4 + $0x130] sm:$0xf0]  ;;  %v2303_v3 = vld [vmem:[#allocation4 + $0x244] sm:$0xf] }
  0x41   :  { %1043 = vmatpush.bf16.msra.mxu0 %v1670_v22  ;;  %v1734_v2 = vor.u32 %v2267_v0, %v1731_v1  ;;  %v1875_v4 = vld [vmem:[#allocation4 + $0x250] sm:$0xf0]  ;;  %v2335_v5 = vld [vmem:[#allocation4 + $0x344] sm:$0xf]  ;;  %v1961_v0 = vld [vmem:[#allocation4 + $0x2e8] sm:$0xf] }
  0x42   :  { %1057 = vmatpush.bf16.msra.mxu1 %v1798_v24  ;;  %v1878_v6 = vor.u32 %v2303_v3, %v1875_v4  ;;  %v2003_v7 = vld [vmem:[#allocation4 + $0x350] sm:$0xf0]  ;;  %v2231_v9 = vld [vmem:[#allocation4 + $0x4] sm:$0xf]  ;;  %v2326_v1 = vld [vmem:[#allocation4 + $0x2f4] sm:$0xf0] }
  0x43   :  { %1071 = vmatpush.bf16.msra.mxu2 %v1926_v34  ;;  %v2006_v8 = vor.u32 %v2335_v5, %v2003_v7  ;;  %v1587_v10 = vld [vmem:[#allocation4 + $0x10] sm:$0xf0]  ;;  %v2263_v11 = vld [vmem:[#allocation4 + $0x104] sm:$0xf]  ;;  %v2358_v5 = vld [vmem:[#allocation4 + $0x3f4] sm:$0xf0] }
  0x44   :  { %1085 = vmatpush.bf16.msra.mxu3 %v2054_v36  ;;  %v1590_v12 = vor.u32 %v2231_v9, %v1587_v10  ;;  %v1715_v13 = vld [vmem:[#allocation4 + $0x110] sm:$0xf0]  ;;  %v2299_v15 = vld [vmem:[#allocation4 + $0x224] sm:$0xf]  ;;  %v2254_v7 = vld [vmem:[#allocation4 + $0xb4] sm:$0xf0] }
  0x45   :  { %1044 = vmatpush.bf16.msra.mxu0 %v1654_v29  ;;  %v1718_v14 = vor.u32 %v2263_v11, %v1715_v13  ;;  %v1859_v16 = vld [vmem:[#allocation4 + $0x230] sm:$0xf0]  ;;  %v2331_v17 = vld [vmem:[#allocation4 + $0x324] sm:$0xf]  ;;  %v87_v29 = vperm.slane %v85_v27, 0 }
  0x46   :  { %1058 = vmatpush.bf16.msra.mxu1 %v1782_v30  ;;  %v1987_v18 = vld [vmem:[#allocation4 + $0x330] sm:$0xf0]  ;;  %v1862_v19 = vor.u32 %v2299_v15, %v1859_v16  ;;  %v2295_v21 = vld [vmem:[#allocation4 + $0x204] sm:$0xf]  ;;  %v1801_v10 = vld [vmem:[#allocation4 + $0x1a8] sm:$0xf] }
  0x47   :  { %1072 = vmatpush.bf16.msra.mxu2 %v1910_v45  ;;  %v1990_v20 = vor.u32 %v2331_v17, %v1987_v18  ;;  %v1843_v22 = vld [vmem:[#allocation4 + $0x210] sm:$0xf0]  ;;  %v2327_v24 = vld [vmem:[#allocation4 + $0x304] sm:$0xf]  ;;  %v1833_v45 = vld [vmem:[#allocation4 + $0x1e8] sm:$0xf] }
  0x48   :  { %1086 = vmatpush.bf16.msra.mxu3 %v2038_v48  ;;  %v1846_v23 = vor.u32 %v2295_v21, %v1843_v22  ;;  %v1971_v25 = vld [vmem:[#allocation4 + $0x310] sm:$0xf0]  ;;  %v2286_v11 = vld [vmem:[#allocation4 + $0x1b4] sm:$0xf0]  ;;  %v1945_v18 = vld [vmem:[#allocation4 + $0x2c8] sm:$0xf] }
  0x49   :  { %1045 = vmatpush.bf16.msra.mxu0 %v1638_v40  ;;  %v1974_v26 = vor.u32 %v2327_v24, %v1971_v25  ;;  %v1705_v40 = vld [vmem:[#allocation4 + $0xe8] sm:$0xf]  ;;  %v1802_v22 = vor.u32 %v2286_v11, %v1801_v10  ;;  %v2250_v25 = vld [vmem:[#allocation4 + $0x94] sm:$0xf0] }
  0x4a   :  { %1059 = vmatpush.bf16.msra.mxu1 %v1766_v42  ;;  %v1706_v50 = vor.u32 %v2262_v41, %v1705_v40  ;;  %v1657_v24 = vld [vmem:[#allocation4 + $0x88] sm:$0xf]  ;;  %v2282_v27 = vld [vmem:[#allocation4 + $0x194] sm:$0xf0] }
  0x4b   :  { %1073 = vmatpush.bf16.msra.mxu2 %v1894_v58  ;;  %v2290_v58 = vld [vmem:[#allocation4 + $0x1d4] sm:$0xf0]  ;;  %v1593_v10 = vld [vmem:[#allocation4 + $0x8] sm:$0xf] }
  0x4c   :  { %1087 = vmatpush.bf16.msra.mxu3 %v2022_v60  ;;  %v1818_v4 = vor.u32 %v2290_v58, %v1817_v57  ;;  %v2310_v57 = vld [vmem:[#allocation4 + $0x274] sm:$0xf0] }
  0x4d   :  { %1046 = vmatpush.bf16.msra.mxu0 %v1622_v52  ;;  %v1834_v52 = vor.u32 %v2294_v46, %v1833_v45  ;;  %v2041_v46 = vld [vmem:[#allocation4 + $0x388] sm:$0xf]  ;;  %v2234_v11 = vld [vmem:[#allocation4 + $0x14] sm:$0xf0] }
  0x4e   :  { %1060 = vmatpush.bf16.msra.mxu1 %v1750_v54  ;;  %v2258_v54 = vld [vmem:[#allocation4 + $0xd4] sm:$0xf0] }
  0x4f   :  { %1074 = vmatpush.bf16.msra.mxu2 %v1878_v6  ;;  %v1673_v6 = vld [vmem:[#allocation4 + $0xa8] sm:$0xf] }
  0x50   :  { %1088 = vmatpush.bf16.msra.mxu3 %v2006_v8  ;;  %v1674_v17 = vor.u32 %v2254_v7, %v1673_v6  ;;  %v2009_v6 = vld [vmem:[#allocation4 + $0x348] sm:$0xf] }
  0x51   :  { %1047 = vmatpush.bf16.msra.mxu0 %v1606_v63  ;;  %v1690_v63 = vor.u32 %v2258_v54, %v1689_v53 }
  0x52   :  { %1061 = vmatpush.bf16.msra.mxu1 %v1734_v2  ;;  %v2089_v2 = vld [vmem:[#allocation4 + $0x3e8] sm:$0xf] }
  0x53   :  { %1075 = vmatpush.bf16.msra.mxu2 %v1862_v19  ;;  %v2090_v16 = vor.u32 %v2358_v5, %v2089_v2  ;;  %v2322_v19 = vld [vmem:[#allocation4 + $0x2d4] sm:$0xf0] }
  0x54   :  { %1089 = vmatpush.bf16.msra.mxu3 %v1990_v20  ;;  %v2073_v20 = vld [vmem:[#allocation4 + $0x3c8] sm:$0xf]  ;;  %v2306_v5 = vld [vmem:[#allocation4 + $0x254] sm:$0xf0] }
  0x55   :  { %1048 = vmatpush.bf16.msra.mxu0 %v1590_v12 }
  0x56   :  { %1062 = vmatpush.bf16.msra.mxu1 %v1718_v14  ;;  %v1962_v14 = vor.u32 %v2326_v1, %v1961_v0  ;;  %v1737_v0 = vld [vmem:[#allocation4 + $0x128] sm:$0xf]  ;;  %v2270_v1 = vld [vmem:[#allocation4 + $0x134] sm:$0xf0] }
  0x57   :  { %1076 = vmatpush.bf16.msra.mxu2 %v1846_v23  ;;  %v2354_v23 = vld [vmem:[#allocation4 + $0x3d4] sm:$0xf0] }
  0x58   :  { %1090 = vmatpush.bf16.msra.mxu3 %v1974_v26  ;;  %v1785_v26 = vld [vmem:[#allocation4 + $0x188] sm:$0xf] }
  0x95   :  { %v148_v28 = vpop.f32.mrf.mxu0 }
  0x96   :  { %v162_v30 = vpop.f32.mrf.mxu1  ;;  %v149_v32 = vadd.f32 %v148_v28, %v87_v29  ;;  %v1946_v28 = vor.u32 %v2322_v19, %v1945_v18  ;;  %v2292_v18 = vld [vmem:[#allocation4 + $0x1ec] sm:$0xf]  ;;  %v1835_v19 = vld [vmem:[#allocation4 + $0x1f8] sm:$0xf0] }
  0x97   :  { %v163_v33 = vadd.f32 %v162_v30, %v88_v31  ;;  %v1658_v30 = vor.u32 %v2250_v25, %v1657_v24  ;;  %v1594_v24 = vor.u32 %v2234_v11, %v1593_v10  ;;  %v2244_v10 = vld [vmem:[#allocation4 + $0x6c] sm:$0xf]  ;;  %v1643_v11 = vld [vmem:[#allocation4 + $0x78] sm:$0xf0] }
  0x98   :  { %v195_v37 = vmax.f32 %v149_v32, 0.0  ;;  %v2318_v32 = vld [vmem:[#allocation4 + $0x2b4] sm:$0xf0] }
  0x99   :  { %v196_v42 = vmax.f32 %v163_v33, 0.0  ;;  %v1786_v33 = vor.u32 %v2282_v27, %v1785_v26  ;;  %v1993_v26 = vld [vmem:[#allocation4 + $0x328] sm:$0xf]  ;;  %v2334_v27 = vld [vmem:[#allocation4 + $0x334] sm:$0xf0] }
  0x9d   :  { %v176_v34 = vpop.f32.mrf.mxu2  ;;  %v150_v36 = vpop.f32.mrf.mxu0 }
  0x9e   :  { %v190_v35 = vpop.f32.mrf.mxu3  ;;  %v151_v38 = vadd.f32 %v150_v36, %v87_v29  ;;  %v164_v39 = vpop.f32.mrf.mxu1  ;;  %v177_v55 = vadd.f32 %v176_v34, %v89_v43  ;;  %v2074_v29 = vor.u32 %v2354_v23, %v2073_v20  ;;  %v2057_v34 = vld [vmem:[#allocation4 + $0x3a8] sm:$0xf]  ;;  %v2302_v23 = vld [vmem:[#allocation4 + $0x234] sm:$0xf0] }
  0x9f   :  { %v165_v44 = vadd.f32 %v164_v39, %v88_v31  ;;  %v191_v59 = vadd.f32 %v190_v35, %v90_v47  ;;  %v1929_v31 = vld [vmem:[#allocation4 + $0x2a8] sm:$0xf]  ;;  %v2350_v35 = vld [vmem:[#allocation4 + $0x3b4] sm:$0xf0] }
  0xa0   :  { %v199_v48 = vmax.f32 %v151_v38, 0.0  ;;  %v197_v8 = vmax.f32 %v177_v55, 0.0  ;;  %v1641_v36 = vld [vmem:[#allocation4 + $0x68] sm:$0xf]  ;;  %v2278_v39 = vld [vmem:[#allocation4 + $0x174] sm:$0xf0]  ;;  %v1930_v40 = vor.u32 %v2318_v32, %v1929_v31  ;;  %v2058_v41 = vor.u32 %v2350_v35, %v2057_v34 }
  0xa1   :  { %v200_v49 = vmax.f32 %v165_v44, 0.0  ;;  %v198_v12 = vmax.f32 %v191_v59, 0.0  ;;  %v1769_v38 = vld [vmem:[#allocation4 + $0x168] sm:$0xf]  ;;  %v1691_v32 = vld [vmem:[#allocation4 + $0xd8] sm:$0xf0]  ;;  %v1994_v35 = vor.u32 %v2334_v27, %v1993_v26 }
  0xa2   :  { %v2549_v51 = vpack.c.bf16 %v199_v48, %v195_v37  ;;  %v2246_v37 = vld [vmem:[#allocation4 + $0x74] sm:$0xf0]  ;;  %v1770_v45 = vor.u32 %v2278_v39, %v1769_v38  ;;  %v1625_v48 = vld [vmem:[#allocation4 + $0x48] sm:$0xf]  ;;  %v1819_v34 = vld [vmem:[#allocation4 + $0x1d8] sm:$0xf0] }
  0xa3   :  { %v2551_v56 = vpack.c.bf16 %v200_v49, %v196_v42  ;;  %v1913_v42 = vld [vmem:[#allocation4 + $0x288] sm:$0xf]  ;;  %v1642_v44 = vor.u32 %v2246_v37, %v1641_v36  ;;  %v2242_v49 = vld [vmem:[#allocation4 + $0x54] sm:$0xf0]  ;;  %v2272_v26 = vld [vmem:[#allocation4 + $0x14c] sm:$0xf] }
  0xa4   :  { %993 = vmatmul.bf16.vlgmr.msrb.gmra.mxu0 %v2549_v51  ;;  %v1897_v55 = vld [vmem:[#allocation4 + $0x268] sm:$0xf]  ;;  %v1626_v58 = vor.u32 %v2242_v49, %v1625_v48  ;;  %v2298_v37 = vld [vmem:[#allocation4 + $0x214] sm:$0xf0]  ;;  %v1675_v48 = vld [vmem:[#allocation4 + $0xb8] sm:$0xf0] }
  0xa5   :  { %v178_v60 = vpop.f32.mrf.mxu2  ;;  %1007 = vmatmul.bf16.vlgmr.msrb.gmra.mxu1 %v2551_v56  ;;  %1097 = vmatpush.bf16.msrb.mxu0 %v1706_v50  ;;  %v1753_v50 = vld [vmem:[#allocation4 + $0x148] sm:$0xf]  ;;  %v1898_v2 = vor.u32 %v2310_v57, %v1897_v55  ;;  %v2330_v39 = vld [vmem:[#allocation4 + $0x314] sm:$0xf0]  ;;  %v2284_v49 = vld [vmem:[#allocation4 + $0x1ac] sm:$0xf] }
  0xa6   :  { %v179_v61 = vadd.f32 %v178_v60, %v89_v43  ;;  %v192_v62 = vpop.f32.mrf.mxu3  ;;  %1111 = vmatpush.bf16.msrb.mxu1 %v1834_v52  ;;  %v2314_v43 = vld [vmem:[#allocation4 + $0x294] sm:$0xf0]  ;;  %v2025_v60 = vld [vmem:[#allocation4 + $0x368] sm:$0xf]  ;;  %v2320_v55 = vld [vmem:[#allocation4 + $0x2cc] sm:$0xf] }
  0xa7   :  { %v193_v3 = vadd.f32 %v192_v62, %v90_v47  ;;  %v2346_v47 = vld [vmem:[#allocation4 + $0x394] sm:$0xf0]  ;;  %v1914_v53 = vor.u32 %v2314_v43, %v1913_v42  ;;  %v1609_v62 = vld [vmem:[#allocation4 + $0x28] sm:$0xf]  ;;  %v1947_v57 = vld [vmem:[#allocation4 + $0x2d8] sm:$0xf0] }
  0xa8   :  { %v201_v9 = vmax.f32 %v179_v61, 0.0  ;;  %v2274_v52 = vld [vmem:[#allocation4 + $0x154] sm:$0xf0]  ;;  %v2042_v54 = vor.u32 %v2346_v47, %v2041_v46  ;;  %v1849_v36 = vld [vmem:[#allocation4 + $0x208] sm:$0xf] }
  0xa9   :  { %v202_v13 = vmax.f32 %v193_v3, 0.0  ;;  %1098 = vmatpush.bf16.msrb.mxu0 %v1690_v63  ;;  %v1754_v59 = vor.u32 %v2274_v52, %v1753_v50  ;;  %v2342_v61 = vld [vmem:[#allocation4 + $0x374] sm:$0xf0]  ;;  %v1977_v38 = vld [vmem:[#allocation4 + $0x308] sm:$0xf]  ;;  %v1850_v47 = vor.u32 %v2298_v37, %v1849_v36 }
  0xaa   :  { %v2555_v15 = vpack.c.bf16 %v201_v9, %v197_v8  ;;  %1112 = vmatpush.bf16.msrb.mxu1 %v1818_v4  ;;  %v2238_v63 = vld [vmem:[#allocation4 + $0x34] sm:$0xf0]  ;;  %v2026_v3 = vor.u32 %v2342_v61, %v2025_v60  ;;  %v1881_v4 = vld [vmem:[#allocation4 + $0x248] sm:$0xf]  ;;  %v1738_v8 = vor.u32 %v2270_v1, %v1737_v0  ;;  %v2252_v46 = vld [vmem:[#allocation4 + $0xac] sm:$0xf]  ;;  %v1978_v52 = vor.u32 %v2330_v39, %v1977_v38 }
  0xab   :  { %v2557_v21 = vpack.c.bf16 %v202_v13, %v198_v12  ;;  %v1610_v7 = vor.u32 %v2238_v63, %v1609_v62  ;;  %v2338_v9 = vld [vmem:[#allocation4 + $0x354] sm:$0xf0]  ;;  %v1721_v12 = vld [vmem:[#allocation4 + $0x108] sm:$0xf]  ;;  %v1803_v50 = vld [vmem:[#allocation4 + $0x1b8] sm:$0xf0] }
  0xac   :  { %1021 = vmatmul.bf16.vlgmr.msrb.gmra.mxu2 %v2555_v15  ;;  %v2266_v13 = vld [vmem:[#allocation4 + $0x114] sm:$0xf0]  ;;  %v2010_v20 = vor.u32 %v2338_v9, %v2009_v6  ;;  %v2352_v60 = vld [vmem:[#allocation4 + $0x3cc] sm:$0xf]  ;;  %v2075_v61 = vld [vmem:[#allocation4 + $0x3d8] sm:$0xf0] }
  0xad   :  { %1035 = vmatmul.bf16.vlgmr.msrb.gmra.mxu3 %v2557_v21  ;;  %1125 = vmatpush.bf16.msrb.mxu2 %v1962_v14  ;;  %v2260_v14 = vld [vmem:[#allocation4 + $0xec] sm:$0xf]  ;;  %v1722_v25 = vor.u32 %v2266_v13, %v1721_v12  ;;  %v1659_v63 = vld [vmem:[#allocation4 + $0x98] sm:$0xf0] }
  0xae   :  { %1139 = vmatpush.bf16.msrb.mxu3 %v2090_v16  ;;  %1099 = vmatpush.bf16.msrb.mxu0 %v1674_v17  ;;  %v1882_v16 = vor.u32 %v2306_v5, %v1881_v4  ;;  %v1707_v17 = vld [vmem:[#allocation4 + $0xf8] sm:$0xf0]  ;;  %v2248_v62 = vld [vmem:[#allocation4 + $0x8c] sm:$0xf] }
  0xaf   :  { %1113 = vmatpush.bf16.msrb.mxu1 %v1802_v22  ;;  %v1865_v22 = vld [vmem:[#allocation4 + $0x228] sm:$0xf]  ;;  %v2280_v0 = vld [vmem:[#allocation4 + $0x18c] sm:$0xf]  ;;  %v1787_v1 = vld [vmem:[#allocation4 + $0x198] sm:$0xf0]  ;;  %v1662_v6 = vor.u32 %v2248_v62, %v1659_v63 }
  0xb0   :  { %v1866_v31 = vor.u32 %v2302_v23, %v1865_v22  ;;  %v2316_v4 = vld [vmem:[#allocation4 + $0x2ac] sm:$0xf]  ;;  %v1931_v5 = vld [vmem:[#allocation4 + $0x2b8] sm:$0xf0] }
  0xb1   :  { %1126 = vmatpush.bf16.msrb.mxu2 %v1946_v28  ;;  %v1710_v28 = vor.u32 %v2260_v14, %v1707_v17  ;;  %v2059_v9 = vld [vmem:[#allocation4 + $0x3b8] sm:$0xf0]  ;;  %v2276_v12 = vld [vmem:[#allocation4 + $0x16c] sm:$0xf]  ;;  %v1934_v14 = vor.u32 %v2316_v4, %v1931_v5 }
  0xb2   :  { %1140 = vmatpush.bf16.msrb.mxu3 %v2074_v29  ;;  %1100 = vmatpush.bf16.msrb.mxu0 %v1658_v30  ;;  %v1838_v29 = vor.u32 %v2292_v18, %v1835_v19  ;;  %v2256_v30 = vld [vmem:[#allocation4 + $0xcc] sm:$0xf]  ;;  %v1771_v13 = vld [vmem:[#allocation4 + $0x178] sm:$0xf0]  ;;  %v1646_v19 = vor.u32 %v2244_v10, %v1643_v11 }
  0xb3   :  { %1114 = vmatpush.bf16.msrb.mxu1 %v1786_v33  ;;  %v2288_v33 = vld [vmem:[#allocation4 + $0x1cc] sm:$0xf]  ;;  %v1694_v42 = vor.u32 %v2256_v30, %v1691_v32  ;;  %v1915_v18 = vld [vmem:[#allocation4 + $0x298] sm:$0xf0] }
  0xb4   :  { %1049 = vmatmul.bf16.vlgmr.msra.gmra.mxu0 %v2549_v51  ;;  %v1822_v43 = vor.u32 %v2288_v33, %v1819_v34  ;;  %v2312_v17 = vld [vmem:[#allocation4 + $0x28c] sm:$0xf]  ;;  %v2043_v23 = vld [vmem:[#allocation4 + $0x398] sm:$0xf0] }
  0xb5   :  { %1127 = vmatpush.bf16.msrb.mxu2 %v1930_v40  ;;  %1063 = vmatmul.bf16.vlgmr.msra.gmra.mxu1 %v2551_v56  ;;  %v2324_v40 = vld [vmem:[#allocation4 + $0x2ec] sm:$0xf]  ;;  %v1755_v27 = vld [vmem:[#allocation4 + $0x158] sm:$0xf0] }
  0xb6   :  { %1141 = vmatpush.bf16.msrb.mxu3 %v2058_v41  ;;  %1101 = vmatpush.bf16.msrb.mxu0 %v1642_v44  ;;  %v1963_v41 = vld [vmem:[#allocation4 + $0x2f8] sm:$0xf0]  ;;  %v2356_v44 = vld [vmem:[#allocation4 + $0x3ec] sm:$0xf]  ;;  %v1758_v33 = vor.u32 %v2272_v26, %v1755_v27  ;;  %v2367_v27 = vld [vmem:[#allocation6 + $0x40] sm:$0xff] }
  0xb7   :  { %1115 = vmatpush.bf16.msrb.mxu1 %v1770_v45  ;;  %v2091_v45 = vld [vmem:[#allocation4 + $0x3f8] sm:$0xf0]  ;;  %v2344_v22 = vld [vmem:[#allocation4 + $0x38c] sm:$0xf] }
  0xb8   :  { %v2308_v30 = vld [vmem:[#allocation4 + $0x26c] sm:$0xf]  ;;  %v1611_v37 = vld [vmem:[#allocation4 + $0x38] sm:$0xf0] }
  0xb9   :  { %1128 = vmatpush.bf16.msrb.mxu2 %v1914_v53  ;;  %v1966_v53 = vor.u32 %v2324_v40, %v1963_v41  ;;  %v2340_v34 = vld [vmem:[#allocation4 + $0x36c] sm:$0xf]  ;;  %v1739_v39 = vld [vmem:[#allocation4 + $0x138] sm:$0xf0] }
  0xba   :  { %1142 = vmatpush.bf16.msrb.mxu3 %v2042_v54  ;;  %1102 = vmatpush.bf16.msrb.mxu0 %v1626_v58  ;;  %v2094_v54 = vor.u32 %v2356_v44, %v2091_v45  ;;  %v1678_v58 = vor.u32 %v2252_v46, %v1675_v48  ;;  %v2236_v36 = vld [vmem:[#allocation4 + $0x2c] sm:$0xf]  ;;  %v2366_v62 = vld [vmem:[#allocation6 + $0x38] sm:$0xff] }
  0xbb   :  { %1116 = vmatpush.bf16.msrb.mxu1 %v1754_v59  ;;  %v1806_v59 = vor.u32 %v2284_v49, %v1803_v50  ;;  %v2268_v38 = vld [vmem:[#allocation4 + $0x12c] sm:$0xf]  ;;  %v1614_v44 = vor.u32 %v2236_v36, %v1611_v37  ;;  %v1595_v49 = vld [vmem:[#allocation4 + $0x18] sm:$0xf0] }
  0xbc   :  { %1077 = vmatmul.bf16.vlgmr.msra.gmra.mxu2 %v2555_v15  ;;  %v1742_v45 = vor.u32 %v2268_v38, %v1739_v39  ;;  %v2336_v46 = vld [vmem:[#allocation4 + $0x34c] sm:$0xf]  ;;  %v1979_v4 = vld [vmem:[#allocation4 + $0x318] sm:$0xf0]  ;;  %v2377_v38 = vld [vmem:[#allocation6 + $0x90] sm:$0xff] }
  0xbd   :  { %1091 = vmatmul.bf16.vlgmr.msra.gmra.mxu3 %v2557_v21  ;;  %1129 = vmatpush.bf16.msrb.mxu2 %v1898_v2  ;;  %v1950_v2 = vor.u32 %v2320_v55, %v1947_v57  ;;  %v2232_v48 = vld [vmem:[#allocation4 + $0xc] sm:$0xf]  ;;  %v1867_v57 = vld [vmem:[#allocation4 + $0x238] sm:$0xf0] }
  0xbe   :  { %1143 = vmatpush.bf16.msrb.mxu3 %v2026_v3  ;;  %1103 = vmatpush.bf16.msrb.mxu0 %v1610_v7  ;;  %v2078_v3 = vor.u32 %v2352_v60, %v2075_v61  ;;  %v1790_v7 = vor.u32 %v2280_v0, %v1787_v1  ;;  %v2264_v50 = vld [vmem:[#allocation4 + $0x10c] sm:$0xf]  ;;  %v1995_v61 = vld [vmem:[#allocation4 + $0x338] sm:$0xf0] }
  0xbf   :  { %1117 = vmatpush.bf16.msrb.mxu1 %v1738_v8  ;;  %v2348_v8 = vld [vmem:[#allocation4 + $0x3ac] sm:$0xf]  ;;  %v2362_v10 = vld [vmem:[#allocation6 + $0x18] sm:$0xff] }
  0xc0   :  { %v2300_v55 = vld [vmem:[#allocation4 + $0x22c] sm:$0xf]  ;;  %v2374_v11 = vld [vmem:[#allocation6 + $0x78] sm:$0xff] }
  0xc1   :  { %1130 = vmatpush.bf16.msrb.mxu2 %v1882_v16  ;;  %v2062_v16 = vor.u32 %v2348_v8, %v2059_v9  ;;  %v2332_v60 = vld [vmem:[#allocation4 + $0x32c] sm:$0xf]  ;;  %v1870_v63 = vor.u32 %v2300_v55, %v1867_v57  ;;  %v2363_v9 = vld [vmem:[#allocation6 + $0x20] sm:$0xff] }
  0xc2   :  { %1144 = vmatpush.bf16.msrb.mxu3 %v2010_v20  ;;  %1104 = vmatpush.bf16.msrb.mxu0 %v1594_v24  ;;  %v1774_v20 = vor.u32 %v2276_v12, %v1771_v13  ;;  %v2240_v24 = vld [vmem:[#allocation4 + $0x4c] sm:$0xf]  ;;  %v1998_v0 = vor.u32 %v2332_v60, %v1995_v61  ;;  %v2373_v12 = vld [vmem:[#allocation6 + $0x70] sm:$0xff] }
  0xc3   :  { %1118 = vmatpush.bf16.msrb.mxu1 %v1722_v25  ;;  %v1627_v25 = vld [vmem:[#allocation4 + $0x58] sm:$0xf0]  ;;  %v2296_v1 = vld [vmem:[#allocation4 + $0x20c] sm:$0xf] }
  0xc4   :  { %v1630_v32 = vor.u32 %v2240_v24, %v1627_v25  ;;  %v2364_v8 = vld [vmem:[#allocation6 + $0x28] sm:$0xff] }
  0xc5   :  { %1131 = vmatpush.bf16.msrb.mxu2 %v1866_v31  ;;  %1105 = vmatmul.bf16.vlgmr.msrb.gmra.mxu0 %v2549_v51  ;;  %v1899_v31 = vld [vmem:[#allocation4 + $0x278] sm:$0xf0]  ;;  %v2372_v13 = vld [vmem:[#allocation6 + $0x68] sm:$0xff] }
  0xc6   :  { %1153 = vmatpush.bf16.msra.mxu0 %v1710_v28  ;;  %1145 = vmatpush.bf16.msrb.mxu3 %v1994_v35  ;;  %v1918_v28 = vor.u32 %v2312_v17, %v1915_v18  ;;  %v2027_v35 = vld [vmem:[#allocation4 + $0x378] sm:$0xf0]  ;;  %v1902_v40 = vor.u32 %v2308_v30, %v1899_v31  ;;  %v2380_v24 = vld [vmem:[#allocation6 + $0xa8] sm:$0xff] }
  0xc7   :  { %1167 = vmatpush.bf16.msra.mxu1 %v1838_v29  ;;  %v2046_v29 = vor.u32 %v2344_v22, %v2043_v23  ;;  %v2030_v41 = vor.u32 %v2340_v34, %v2027_v35  ;;  %v2576_v22 = vld [vmem:[%s2592_s4] sm:$0xf]  ;;  %v2368_v23 = vld [vmem:[#allocation6 + $0x48] sm:$0xff] }
  0xc8   :  { %1119 = vmatmul.bf16.vlgmr.msrb.gmra.mxu1 %v2551_v56  ;;  %v337_v25 = vperm.slane %v2576_v22, 0 }
  0xc9   :  { %1132 = vmatpush.bf16.msrb.mxu2 %v1850_v47  ;;  %v2011_v47 = vld [vmem:[#allocation4 + $0x358] sm:$0xf0] }
  0xca   :  { %1154 = vmatpush.bf16.msra.mxu0 %v1694_v42  ;;  %1146 = vmatpush.bf16.msrb.mxu3 %v1978_v52  ;;  %v2304_v42 = vld [vmem:[#allocation4 + $0x24c] sm:$0xf]  ;;  %v1723_v52 = vld [vmem:[#allocation4 + $0x118] sm:$0xf0] }
  0xcb   :  { %1168 = vmatpush.bf16.msra.mxu1 %v1822_v43  ;;  %v1883_v43 = vld [vmem:[#allocation4 + $0x258] sm:$0xf0] }
  0xcc   :  { %1133 = vmatmul.bf16.vlgmr.msrb.gmra.mxu2 %v2555_v15 }
  0xcd   :  { %1181 = vmatpush.bf16.msra.mxu2 %v1966_v53  ;;  %1147 = vmatmul.bf16.vlgmr.msrb.gmra.mxu3 %v2557_v21  ;;  %v1886_v53 = vor.u32 %v2304_v42, %v1883_v43 }
  0xce   :  { %1195 = vmatpush.bf16.msra.mxu3 %v2094_v54  ;;  %1155 = vmatpush.bf16.msra.mxu0 %v1678_v58  ;;  %v2014_v54 = vor.u32 %v2336_v46, %v2011_v47  ;;  %v1598_v58 = vor.u32 %v2232_v48, %v1595_v49  ;;  %v338_v46 = vperm.slane %v2576_v22, 1 }
  0xcf   :  { %1169 = vmatpush.bf16.msra.mxu1 %v1806_v59  ;;  %v1726_v59 = vor.u32 %v2264_v50, %v1723_v52  ;;  %v2375_v52 = vld [vmem:[#allocation6 + $0x80] sm:$0xff] }
  0xd1   :  { %1182 = vmatpush.bf16.msra.mxu2 %v1950_v2  ;;  %v1851_v2 = vld [vmem:[#allocation4 + $0x218] sm:$0xf0] }
  0xd2   :  { %1196 = vmatpush.bf16.msra.mxu3 %v2078_v3  ;;  %1156 = vmatpush.bf16.msra.mxu0 %v1662_v6  ;;  %v2328_v3 = vld [vmem:[#allocation4 + $0x30c] sm:$0xf]  ;;  %v1854_v5 = vor.u32 %v2296_v1, %v1851_v2 }
  0xd3   :  { %1170 = vmatpush.bf16.msra.mxu1 %v1790_v7  ;;  %v1982_v6 = vor.u32 %v2328_v3, %v1979_v4  ;;  %v2365_v7 = vld [vmem:[#allocation6 + $0x30] sm:$0xff] }
  0xd5   :  { %1183 = vmatpush.bf16.msra.mxu2 %v1934_v14  ;;  %v2370_v14 = vld [vmem:[#allocation6 + $0x58] sm:$0xff] }
  0xd6   :  { %1197 = vmatpush.bf16.msra.mxu3 %v2062_v16  ;;  %1157 = vmatpush.bf16.msra.mxu0 %v1646_v19  ;;  %v2382_v16 = vld [vmem:[#allocation6 + $0xb8] sm:$0xff]  ;;  %v2369_v19 = vld [vmem:[#allocation6 + $0x50] sm:$0xff] }
  0xd7   :  { %1171 = vmatpush.bf16.msra.mxu1 %v1774_v20  ;;  %v2381_v20 = vld [vmem:[#allocation6 + $0xb0] sm:$0xff] }
  0xd9   :  { %1184 = vmatpush.bf16.msra.mxu2 %v1918_v28  ;;  %v2379_v28 = vld [vmem:[#allocation6 + $0xa0] sm:$0xff] }
  0xda   :  { %1198 = vmatpush.bf16.msra.mxu3 %v2046_v29  ;;  %1158 = vmatpush.bf16.msra.mxu0 %v1630_v32 }
  0xdb   :  { %1172 = vmatpush.bf16.msra.mxu1 %v1758_v33  ;;  %v2378_v33 = vld [vmem:[#allocation6 + $0x98] sm:$0xff] }
  0xdd   :  { %1185 = vmatpush.bf16.msra.mxu2 %v1902_v40 }
  0xde   :  { %1199 = vmatpush.bf16.msra.mxu3 %v2030_v41  ;;  %1159 = vmatpush.bf16.msra.mxu0 %v1614_v44 }
  0xdf   :  { %1173 = vmatpush.bf16.msra.mxu1 %v1742_v45  ;;  %v2376_v45 = vld [vmem:[#allocation6 + $0x88] sm:$0xff] }
  0xe1   :  { %1186 = vmatpush.bf16.msra.mxu2 %v1886_v53  ;;  %v2390_v53 = vld [vmem:[#allocation6 + $0xf8] sm:$0xff] }
  0xe2   :  { %1200 = vmatpush.bf16.msra.mxu3 %v2014_v54  ;;  %1160 = vmatpush.bf16.msra.mxu0 %v1598_v58 }
  0xe3   :  { %1174 = vmatpush.bf16.msra.mxu1 %v1726_v59  ;;  %v2389_v59 = vld [vmem:[#allocation6 + $0xf0] sm:$0xff] }
  0xe5   :  { %1187 = vmatpush.bf16.msra.mxu2 %v1870_v63  ;;  %1161 = vmatmul.bf16.vlgmr.msra.gmra.mxu0 %v2549_v51  ;;  %v2361_v51 = vld [vmem:[#allocation6 + $0x10] sm:$0xff]  ;;  %v2388_v63 = vld [vmem:[#allocation6 + $0xe8] sm:$0xff] }
  0xe6   :  { %1481 = vmatpush.bf16.msrb.mxu0 %v2366_v62  ;;  %1201 = vmatpush.bf16.msra.mxu3 %v1998_v0 }
  0xe7   :  { %1175 = vmatmul.bf16.vlgmr.msra.gmra.mxu1 %v2551_v56  ;;  %v2360_v56 = vld [vmem:[#allocation6 + $0x8] sm:$0xff] }
  0xe8   :  { %1495 = vmatpush.bf16.msrb.mxu1 %v2374_v11 }
  0xe9   :  { %1188 = vmatpush.bf16.msra.mxu2 %v1854_v5 }
  0xea   :  { %1202 = vmatpush.bf16.msra.mxu3 %v1982_v6  ;;  %1482 = vmatpush.bf16.msrb.mxu0 %v2365_v7  ;;  %v2387_v7 = vld [vmem:[#allocation6 + $0xe0] sm:$0xff] }
  0xec   :  { %1189 = vmatmul.bf16.vlgmr.msra.gmra.mxu2 %v2555_v15  ;;  %1496 = vmatpush.bf16.msrb.mxu1 %v2373_v12  ;;  %v2359_v15 = vld [vmem:[#allocation6] sm:$0xff]  ;;  %v2386_v12 = vld [vmem:[#allocation6 + $0xd8] sm:$0xff] }
  0xed   :  { %1203 = vmatmul.bf16.vlgmr.msra.gmra.mxu3 %v2557_v21  ;;  %v2371_v21 = vld [vmem:[#allocation6 + $0x60] sm:$0xff]  ;;  %1509 = vmatpush.bf16.msrb.mxu2 %v2382_v16  ;;  %v2385_v16 = vld [vmem:[#allocation6 + $0xd0] sm:$0xff] }
  0xee   :  { %1483 = vmatpush.bf16.msrb.mxu0 %v2364_v8  ;;  %1523 = vmatpush.bf16.msrb.mxu3 %v2390_v53 }
  0xf0   :  { %1497 = vmatpush.bf16.msrb.mxu1 %v2372_v13 }
  0xf1   :  { %1510 = vmatpush.bf16.msrb.mxu2 %v2381_v20  ;;  %v2384_v20 = vld [vmem:[#allocation6 + $0xc8] sm:$0xff] }
  0xf2   :  { %1484 = vmatpush.bf16.msrb.mxu0 %v2363_v9  ;;  %1524 = vmatpush.bf16.msrb.mxu3 %v2389_v59  ;;  %v339_v9 = vperm.slane %v2576_v22, 2 }
  0xf4   :  { %1498 = vmatpush.bf16.msrb.mxu1 %v2371_v21 }
  0xf5   :  { %1511 = vmatpush.bf16.msrb.mxu2 %v2380_v24 }
  0xf6   :  { %1485 = vmatpush.bf16.msrb.mxu0 %v2362_v10  ;;  %1525 = vmatpush.bf16.msrb.mxu3 %v2388_v63 }
  0xf8   :  { %1499 = vmatpush.bf16.msrb.mxu1 %v2370_v14 }
  0xf9   :  { %1512 = vmatpush.bf16.msrb.mxu2 %v2379_v28  ;;  %v2383_v28 = vld [vmem:[#allocation6 + $0xc0] sm:$0xff] }
  0xfa   :  { %1486 = vmatpush.bf16.msrb.mxu0 %v2361_v51  ;;  %1526 = vmatpush.bf16.msrb.mxu3 %v2387_v7 }
  0xfc   :  { %1500 = vmatpush.bf16.msrb.mxu1 %v2369_v19 }
  0xfd   :  { %1513 = vmatpush.bf16.msrb.mxu2 %v2378_v33 }
  0xfe   :  { %1487 = vmatpush.bf16.msrb.mxu0 %v2360_v56  ;;  %1527 = vmatpush.bf16.msrb.mxu3 %v2386_v12 }
 0x100   :  { %1501 = vmatpush.bf16.msrb.mxu1 %v2368_v23 }
 0x101   :  { %1514 = vmatpush.bf16.msrb.mxu2 %v2377_v38 }
 0x102   :  { %1488 = vmatpush.bf16.msrb.mxu0 %v2359_v15  ;;  %1528 = vmatpush.bf16.msrb.mxu3 %v2385_v16 }
 0x104   :  { %1502 = vmatpush.bf16.msrb.mxu1 %v2367_v27 }
 0x105   :  { %1515 = vmatpush.bf16.msrb.mxu2 %v2376_v45 }
 0x106   :  { %1529 = vmatpush.bf16.msrb.mxu3 %v2384_v20 }
 0x109   :  { %1516 = vmatpush.bf16.msrb.mxu2 %v2375_v52 }
 0x10a   :  { %1530 = vmatpush.bf16.msrb.mxu3 %v2383_v28 }
 0x121   :  { %v994_v17 = vpop.f32.mrf.mxu0 }
 0x122   :  { %v1008_v18 = vpop.f32.mrf.mxu1  ;;  %v995_v29 = vadd.f32 %v994_v17, %v337_v25 }
 0x124   :  { %v1009_v34 = vadd.f32 %v1008_v18, %v995_v29 }
 0x129   :  { %v996_v26 = vpop.f32.mrf.mxu0 }
 0x12a   :  { %v1010_v30 = vpop.f32.mrf.mxu1  ;;  %v997_v35 = vadd.f32 %v996_v26, %v337_v25 }
 0x12c   :  { %v1011_v39 = vadd.f32 %v1010_v30, %v997_v35  ;;  %v340_v35 = vperm.slane %v2576_v22, 3 }
 0x12f   :  { %v1022_v31 = vpop.f32.mrf.mxu2 }
 0x130   :  { %v1036_v32 = vpop.f32.mrf.mxu3  ;;  %v1023_v37 = vadd.f32 %v1022_v31, %v1009_v34 }
 0x131   :  { %v1050_v36 = vpop.f32.mrf.mxu0 }
 0x132   :  { %v1037_v41 = vadd.f32 %v1036_v32, %v1023_v37  ;;  %v1064_v42 = vpop.f32.mrf.mxu1  ;;  %v1051_v54 = vadd.f32 %v1050_v36, %v338_v46 }
 0x134   :  { %v1209_v49 = vmax.f32 %v1037_v41, 0.0  ;;  %v1065_v60 = vadd.f32 %v1064_v42, %v1051_v54 }
 0x137   :  { %v1024_v40 = vpop.f32.mrf.mxu2 }
 0x138   :  { %v1025_v43 = vadd.f32 %v1024_v40, %v1011_v39  ;;  %v1038_v44 = vpop.f32.mrf.mxu3 }
 0x139   :  { %v1052_v48 = vpop.f32.mrf.mxu0 }
 0x13a   :  { %v1039_v47 = vadd.f32 %v1038_v44, %v1025_v43  ;;  %v1053_v61 = vadd.f32 %v1052_v48, %v338_v46  ;;  %v1066_v62 = vpop.f32.mrf.mxu1 }
 0x13c   :  { %v1213_v50 = vmax.f32 %v1039_v47, 0.0  ;;  %v1067_v2 = vadd.f32 %v1066_v62, %v1053_v61 }
 0x13e   :  { %v1217_v55 = vpack.c.bf16 %v1213_v50, %v1209_v49 }
 0x13f   :  { %v1078_v57 = vpop.f32.mrf.mxu2 }
 0x140   :  { %v1092_v58 = vpop.f32.mrf.mxu3  ;;  %1489 = vmatmul.bf16.vlgmr.msrb.gmra.mxu0 %v1217_v55  ;;  %v1079_v0 = vadd.f32 %v1078_v57, %v1065_v60 }
 0x142   :  { %v1106_v1 = vpop.f32.mrf.mxu0  ;;  %v1093_v4 = vadd.f32 %v1092_v58, %v1079_v0  ;;  %v2403_v58 = vld [vmem:[%s2594_s6] ss:$0 sm:$0xff] }
 0x143   :  { %v1107_v13 = vadd.f32 %v1106_v1, %v339_v9 }
 0x144   :  { %v1210_v10 = vmax.f32 %v1093_v4, 0.0 }
 0x145   :  { %v1120_v11 = vpop.f32.mrf.mxu1 }
 0x146   :  { %v1121_v17 = vadd.f32 %v1120_v11, %v1107_v13 }
 0x147   :  { %v1080_v3 = vpop.f32.mrf.mxu2 }
 0x148   :  { %v1081_v5 = vadd.f32 %v1080_v3, %v1067_v2  ;;  %v1094_v6 = vpop.f32.mrf.mxu3 }
 0x14a   :  { %v1095_v8 = vadd.f32 %v1094_v6, %v1081_v5  ;;  %v1108_v15 = vpop.f32.mrf.mxu0 }
 0x14b   :  { %v1109_v18 = vadd.f32 %v1108_v15, %v339_v9 }
 0x14c   :  { %v1214_v51 = vmax.f32 %v1095_v8, 0.0 }
 0x14d   :  { %v1122_v23 = vpop.f32.mrf.mxu1 }
 0x14e   :  { %v1218_v56 = vpack.c.bf16 %v1214_v51, %v1210_v10  ;;  %v1123_v24 = vadd.f32 %v1122_v23, %v1109_v18 }
 0x14f   :  { %v1134_v21 = vpop.f32.mrf.mxu2 }
 0x150   :  { %v1148_v14 = vpop.f32.mrf.mxu3  ;;  %1503 = vmatmul.bf16.vlgmr.msrb.gmra.mxu1 %v1218_v56  ;;  %v1135_v19 = vadd.f32 %v1134_v21, %v1121_v17 }
 0x152   :  { %v1149_v26 = vadd.f32 %v1148_v14, %v1135_v19 }
 0x154   :  { %v1211_v31 = vmax.f32 %v1149_v26, 0.0 }
 0x157   :  { %v1136_v25 = vpop.f32.mrf.mxu2 }
 0x158   :  { %v1137_v27 = vadd.f32 %v1136_v25, %v1123_v24  ;;  %v1150_v29 = vpop.f32.mrf.mxu3 }
 0x15a   :  { %v1151_v30 = vadd.f32 %v1150_v29, %v1137_v27 }
 0x15c   :  { %v1215_v32 = vmax.f32 %v1151_v30, 0.0 }
 0x15e   :  { %v1219_v33 = vpack.c.bf16 %v1215_v32, %v1211_v31 }
 0x160   :  { %1517 = vmatmul.bf16.vlgmr.msrb.gmra.mxu2 %v1219_v33 }
 0x162   :  { %v1162_v34 = vpop.f32.mrf.mxu0 }
 0x163   :  { %v1163_v37 = vadd.f32 %v1162_v34, %v340_v35 }
 0x164   :  { %v1176_v36 = vpop.f32.mrf.mxu1 }
 0x165   :  { %v1177_v41 = vadd.f32 %v1176_v36, %v1163_v37 }
 0x16a   :  { %v1164_v38 = vpop.f32.mrf.mxu0 }
 0x16b   :  { %v1165_v42 = vadd.f32 %v1164_v38, %v340_v35 }
 0x16c   :  { %v1178_v44 = vpop.f32.mrf.mxu1 }
 0x16d   :  { %v1179_v45 = vadd.f32 %v1178_v44, %v1165_v42 }
 0x16f   :  { %v1190_v39 = vpop.f32.mrf.mxu2 }
 0x170   :  { %v1204_v40 = vpop.f32.mrf.mxu3  ;;  %v1191_v43 = vadd.f32 %v1190_v39, %v1177_v41 }
 0x172   :  { %v1205_v47 = vadd.f32 %v1204_v40, %v1191_v43 }
 0x174   :  { %v1212_v52 = vmax.f32 %v1205_v47, 0.0 }
 0x177   :  { %v1192_v46 = vpop.f32.mrf.mxu2 }
 0x178   :  { %v1193_v48 = vadd.f32 %v1192_v46, %v1179_v45  ;;  %v1206_v49 = vpop.f32.mrf.mxu3 }
 0x17a   :  { %v1207_v50 = vadd.f32 %v1206_v49, %v1193_v48 }
 0x17c   :  { %v1216_v53 = vmax.f32 %v1207_v50, 0.0 }
 0x17e   :  { %v1220_v54 = vpack.c.bf16 %v1216_v53, %v1212_v52 }
 0x180   :  { %1531 = vmatmul.bf16.vlgmr.msrb.gmra.mxu3 %v1220_v54 }
 0x1bd   :  { %v1490_v22 = vpop.f32.mrf.mxu0 }
 0x1be   :  { %v1491_v62 = vadd.f32 %v2403_v58, %v1490_v22 }
 0x1c5   :  { %v1492_v59 = vpop.f32.mrf.mxu0 }
 0x1c6   :  { %v1493_v63 = vadd.f32 %v2403_v58, %v1492_v59 }
 0x1cd   :  { %v1504_v55 = vpop.f32.mrf.mxu1 }
 0x1ce   :  { %v1505_v1 = vadd.f32 %v1504_v55, %v1491_v62 }
 0x1d5   :  { %v1506_v61 = vpop.f32.mrf.mxu1 }
 0x1d6   :  { %v1507_v2 = vadd.f32 %v1506_v61, %v1493_v63 }
 0x1e3   :  { %v1518_v57 = vpop.f32.mrf.mxu2 }
 0x1e4   :  { %v1519_v3 = vadd.f32 %v1518_v57, %v1505_v1 }
 0x1eb   :  { %v1520_v0 = vpop.f32.mrf.mxu2 }
 0x1ec   :  { %v1521_v4 = vadd.f32 %v1520_v0, %v1507_v2 }
 0x203   :  { %v1532_v60 = vpop.f32.mrf.mxu3 }
 0x204   :  { %v1533_v6 = vadd.f32 %v1532_v60, %v1519_v3 }
 0x20b   :  { %v1534_v5 = vpop.f32.mrf.mxu3 }
 0x20c   :  { %v1535_v7 = vadd.f32 %v1534_v5, %v1521_v4 }
 0x20e   :  { %v2394_v8 = vpack.c.bf16 %v1535_v7, %v1533_v6 }
 0x210   :  { %2395 = vst [vmem:[%s2595_s7] sm:$0xff] %v2394_v8  }
 0x211   :  { %1545 = vsyncpa [#allocation3], 1 }
 0x212   :  { %1546 = vsyncpa [#allocation5], 1 }

</bundles_post_ra>
